<compile_context>
chip_gen: v7x
topology: tpu7x:2x2x1
jax: 0.10.0
libtpu: 0.0.40
codegen_flags: <defaults>
</compile_context>

<pallas_src>
import functools

import jax
import jax.numpy as jnp
from jax.experimental import pallas as pl
from jax.experimental.pallas import tpu as pltpu


def _aprelu_kernel(x_ref, w1_ref, b1_ref, w2_ref, b2_ref, o_ref, *, hw_inv):
    """APReLU for `batch_block` samples.

    x_ref:  (bb, C, H*W)  input  (channels on sublanes, H*W on lanes)
    w1_ref: (C, 2C)       fc_squeeze weight   (out_features, in_features)
    b1_ref: (C, 1)        fc_squeeze bias
    w2_ref: (C, C)        fc_excitation weight
    b2_ref: (C, 1)        fc_excitation bias
    o_ref:  (bb, C, H*W)  output
    """
    bb = x_ref.shape[0]
    for b in range(bb):  # static unroll over the (small) per-step batch
        x = x_ref[b].astype(jnp.float32)                   # (C, HW)
        x_min = jnp.minimum(x, 0.0)                        # == 0.5*(x - |x|)
        x_max = jnp.maximum(x, 0.0)                        # == relu(x)

        # Global average pool over H*W: lane-axis reduction (XLU), keepdims
        # so no value reshape / relayout is needed.
        g_min = jnp.sum(x_min, axis=-1, keepdims=True) * hw_inv   # (C, 1)
        g_max = jnp.sum(x_max, axis=-1, keepdims=True) * hw_inv   # (C, 1)
        cat = jnp.concatenate([g_min, g_max], axis=0)             # (2C, 1)

        # Squeeze / excitation MLP: two tiny mat-vecs with f32 accumulation.
        s = jnp.dot(w1_ref[...], cat,
                    preferred_element_type=jnp.float32) + b1_ref[...]  # (C,1)
        s = jnp.maximum(s, 0.0)
        e = jnp.dot(w2_ref[...], s,
                    preferred_element_type=jnp.float32) + b2_ref[...]  # (C,1)
        sigma = jax.nn.sigmoid(e)                                      # (C,1)

        # out = relu(x) + sigma * min(x, 0); sigma broadcasts over lanes.
        o_ref[b] = (x_max + sigma * x_min).astype(o_ref.dtype)


def aprelu_forward(x_nchw, w1, b1, w2, b2, *, batch_block=1):
    """APReLU forward matching the PyTorch module (NCHW in / NCHW out)."""
    B, C, H, W = x_nchw.shape
    assert B % batch_block == 0, "batch must divide batch_block"
    assert w1.shape == (C, 2 * C) and w2.shape == (C, C)
    HW = H * W

    x = x_nchw.reshape(B, C, HW)          # free reshape, no transpose
    b1c = b1.reshape(C, 1)
    b2c = b2.reshape(C, 1)

    kernel = functools.partial(_aprelu_kernel, hw_inv=1.0 / HW)

    out = pl.pallas_call(
        kernel,
        out_shape=jax.ShapeDtypeStruct((B, C, HW), x.dtype),
        grid_spec=pltpu.PrefetchScalarGridSpec(
            num_scalar_prefetch=0,
            grid=(B // batch_block,),
            in_specs=[
                pl.BlockSpec((batch_block, C, HW), lambda b: (b, 0, 0)),
                pl.BlockSpec((C, 2 * C), lambda b: (0, 0)),
                pl.BlockSpec((C, 1), lambda b: (0, 0)),
                pl.BlockSpec((C, C), lambda b: (0, 0)),
                pl.BlockSpec((C, 1), lambda b: (0, 0)),
            ],
            out_specs=pl.BlockSpec((batch_block, C, HW), lambda b: (b, 0, 0)),
        ),
        compiler_params=pltpu.CompilerParams(
            dimension_semantics=("parallel",)),
    )(x, w1, b1c, w2, b2c)

    return out.reshape(B, C, H, W)        # free reshape back to NCHW


def _reference(x, w1, b1, w2, b2):
    """Pure-JAX reference mirroring the PyTorch APReLU forward."""
    x_min = 0.5 * (x - jnp.abs(x))
    x_max = jnp.maximum(x, 0.0)
    g_min = x_min.mean(axis=(2, 3))                        # (N, C)
    g_max = x_max.mean(axis=(2, 3))                        # (N, C)
    cat = jnp.concatenate([g_min, g_max], axis=1)          # (N, 2C)
    s = jnp.maximum(cat @ w1.T + b1, 0.0)                  # (N, C)
    sigma = jax.nn.sigmoid(s @ w2.T + b2)                  # (N, C)
    return x_max + sigma[:, :, None, None] * x_min


if __name__ == "__main__":
    # Small shapes consistent with the module: in_channels=32, 16x16 spatial.
    B, C, H, W = 2, 32, 16, 16

    key = jax.random.PRNGKey(0)
    kx, k1, k2, kb1, kb2 = jax.random.split(key, 5)

    x = jax.random.normal(kx, (B, C, H, W), dtype=jnp.float32)
    # Kaiming-normal-like (fan_in) init for the two FC weights, small biases.
    w1 = jax.random.normal(k1, (C, 2 * C), dtype=jnp.float32) * (2.0 / (2 * C)) ** 0.5
    b1 = 0.1 * jax.random.normal(kb1, (C,), dtype=jnp.float32)
    w2 = jax.random.normal(k2, (C, C), dtype=jnp.float32) * (2.0 / C) ** 0.5
    b2 = 0.1 * jax.random.normal(kb2, (C,), dtype=jnp.float32)

    out = aprelu_forward(x, w1, b1, w2, b2, batch_block=1)
    out = jax.block_until_ready(out)

    ref = _reference(x, w1, b1, w2, b2)
    assert out.shape == (B, C, H, W)
    assert jnp.allclose(out, ref, atol=1e-4, rtol=1e-4), float(
        jnp.max(jnp.abs(out - ref)))

    print("KERNEL_OK")
</pallas_src>

<mosaic_0001>
module attributes {stable_mosaic.version = 11 : i64} {
  func.func @_aprelu_kernel(%arg0: i32, %arg1: memref<1x32x256xf32, #tpu.memory_space<vmem>>, %arg2: memref<32x64xf32, #tpu.memory_space<vmem>>, %arg3: memref<32x1xf32, #tpu.memory_space<vmem>>, %arg4: memref<32x32xf32, #tpu.memory_space<vmem>>, %arg5: memref<32x1xf32, #tpu.memory_space<vmem>>, %arg6: memref<1x32x256xf32, #tpu.memory_space<vmem>>) attributes {dimension_semantics = [#tpu.dimension_semantics<parallel>], iteration_bounds = array<i64: 2>, scalar_prefetch = 0 : i64, scratch_operands = 0 : i64, tpu.core_type = #tpu.core_type<tc>, window_params = [{transform_indices = @transform_0, window_bounds = array<i64: 1, 32, 256>}, {pipeline_mode = #tpu.pipeline_mode<synchronous>, transform_indices = @transform_1, window_bounds = array<i64: 32, 64>}, {pipeline_mode = #tpu.pipeline_mode<synchronous>, transform_indices = @transform_2, window_bounds = array<i64: 32, 1>}, {pipeline_mode = #tpu.pipeline_mode<synchronous>, transform_indices = @transform_3, window_bounds = array<i64: 32, 32>}, {pipeline_mode = #tpu.pipeline_mode<synchronous>, transform_indices = @transform_4, window_bounds = array<i64: 32, 1>}, {transform_indices = @transform_5, window_bounds = array<i64: 1, 32, 256>}]} {
    %c0 = arith.constant 0 : index
    %c0_0 = arith.constant 0 : index
    %c0_1 = arith.constant 0 : index
    %0 = vector.load %arg1[%c0, %c0_0, %c0_1] : memref<1x32x256xf32, #tpu.memory_space<vmem>>, vector<1x32x256xf32>
    %1 = vector.shape_cast %0 : vector<1x32x256xf32> to vector<32x256xf32>
    %cst = arith.constant 0.000000e+00 : f32
    %2 = vector.broadcast %cst : f32 to vector<32x256xf32>
    %3 = arith.minimumf %1, %2 : vector<32x256xf32>
    %cst_2 = arith.constant 0.000000e+00 : f32
    %4 = vector.broadcast %cst_2 : f32 to vector<32x256xf32>
    %5 = arith.maximumf %1, %4 : vector<32x256xf32>
    %cst_3 = arith.constant dense<0.000000e+00> : vector<32xf32>
    %6 = vector.multi_reduction <add>, %3, %cst_3 [1] : vector<32x256xf32> to vector<32xf32>
    %7 = vector.shape_cast %6 : vector<32xf32> to vector<32x1xf32>
    %cst_4 = arith.constant 3.906250e-03 : f32
    %8 = vector.broadcast %cst_4 : f32 to vector<32x1xf32>
    %9 = arith.mulf %7, %8 : vector<32x1xf32>
    %cst_5 = arith.constant dense<0.000000e+00> : vector<32xf32>
    %10 = vector.multi_reduction <add>, %5, %cst_5 [1] : vector<32x256xf32> to vector<32xf32>
    %11 = vector.shape_cast %10 : vector<32xf32> to vector<32x1xf32>
    %cst_6 = arith.constant 3.906250e-03 : f32
    %12 = vector.broadcast %cst_6 : f32 to vector<32x1xf32>
    %13 = arith.mulf %11, %12 : vector<32x1xf32>
    %14 = tpu.concatenate %9, %13 in 0 : vector<32x1xf32>, vector<32x1xf32> -> vector<64x1xf32>
    %c0_7 = arith.constant 0 : index
    %c0_8 = arith.constant 0 : index
    %15 = vector.load %arg2[%c0_7, %c0_8] : memref<32x64xf32, #tpu.memory_space<vmem>>, vector<32x64xf32>
    %cst_9 = arith.constant dense<0.000000e+00> : vector<32x1xf32>
    %16 = tpu.matmul %15, %14, %cst_9 {dimension_numbers = #tpu.dot_dimension_numbers<[1], [0], [0], [1], [0, 0, 1, 1], [], []>} : vector<32x64xf32>, vector<64x1xf32>, vector<32x1xf32> -> vector<32x1xf32>
    %c0_10 = arith.constant 0 : index
    %c0_11 = arith.constant 0 : index
    %17 = vector.load %arg3[%c0_10, %c0_11] : memref<32x1xf32, #tpu.memory_space<vmem>>, vector<32x1xf32>
    %18 = arith.addf %16, %17 : vector<32x1xf32>
    %cst_12 = arith.constant 0.000000e+00 : f32
    %19 = vector.broadcast %cst_12 : f32 to vector<32x1xf32>
    %20 = arith.maximumf %18, %19 : vector<32x1xf32>
    %c0_13 = arith.constant 0 : index
    %c0_14 = arith.constant 0 : index
    %21 = vector.load %arg4[%c0_13, %c0_14] : memref<32x32xf32, #tpu.memory_space<vmem>>, vector<32x32xf32>
    %cst_15 = arith.constant dense<0.000000e+00> : vector<32x1xf32>
    %22 = tpu.matmul %21, %20, %cst_15 {dimension_numbers = #tpu.dot_dimension_numbers<[1], [0], [0], [1], [0, 0, 1, 1], [], []>} : vector<32x32xf32>, vector<32x1xf32>, vector<32x1xf32> -> vector<32x1xf32>
    %c0_16 = arith.constant 0 : index
    %c0_17 = arith.constant 0 : index
    %23 = vector.load %arg5[%c0_16, %c0_17] : memref<32x1xf32, #tpu.memory_space<vmem>>, vector<32x1xf32>
    %24 = arith.addf %22, %23 : vector<32x1xf32>
    %25 = arith.negf %24 : vector<32x1xf32>
    %26 = math.exp %25 : vector<32x1xf32>
    %cst_18 = arith.constant 1.000000e+00 : f32
    %27 = vector.broadcast %cst_18 : f32 to vector<32x1xf32>
    %28 = arith.addf %27, %26 : vector<32x1xf32>
    %29 = arith.divf %27, %28 : vector<32x1xf32>
    %30 = vector.broadcast %29 : vector<32x1xf32> to vector<32x256xf32>
    %31 = arith.mulf %30, %3 : vector<32x256xf32>
    %32 = arith.addf %5, %31 : vector<32x256xf32>
    %c0_19 = arith.constant 0 : index
    %c0_20 = arith.constant 0 : index
    %c0_21 = arith.constant 0 : index
    %33 = vector.load %arg6[%c0_19, %c0_20, %c0_21] : memref<1x32x256xf32, #tpu.memory_space<vmem>>, vector<1x32x256xf32>
    %34 = vector.shape_cast %33 : vector<1x32x256xf32> to vector<32x256xf32>
    %35 = vector.shape_cast %32 : vector<32x256xf32> to vector<1x32x256xf32>
    tpu.vector_store %arg6[%c0_19, %c0_20, %c0_21], %35 {strides = array<i32>} : memref<1x32x256xf32, #tpu.memory_space<vmem>>, vector<1x32x256xf32>,
    return
  }
  func.func @transform_0(%arg0: i32) -> (i32, i32, i32) {
    %c0_i32 = arith.constant 0 : i32
    %c0_i32_0 = arith.constant 0 : i32
    %c0_i32_1 = arith.constant 0 : i32
    return %arg0, %c0_i32, %c0_i32_0 : i32, i32, i32
  }
  func.func @transform_1(%arg0: i32) -> (i32, i32) {
    %c0_i32 = arith.constant 0 : i32
    %c0_i32_0 = arith.constant 0 : i32
    %c0_i32_1 = arith.constant 0 : i32
    return %c0_i32, %c0_i32_0 : i32, i32
  }
  func.func @transform_2(%arg0: i32) -> (i32, i32) {
    %c0_i32 = arith.constant 0 : i32
    %c0_i32_0 = arith.constant 0 : i32
    %c0_i32_1 = arith.constant 0 : i32
    return %c0_i32, %c0_i32_0 : i32, i32
  }
  func.func @transform_3(%arg0: i32) -> (i32, i32) {
    %c0_i32 = arith.constant 0 : i32
    %c0_i32_0 = arith.constant 0 : i32
    %c0_i32_1 = arith.constant 0 : i32
    return %c0_i32, %c0_i32_0 : i32, i32
  }
  func.func @transform_4(%arg0: i32) -> (i32, i32) {
    %c0_i32 = arith.constant 0 : i32
    %c0_i32_0 = arith.constant 0 : i32
    %c0_i32_1 = arith.constant 0 : i32
    return %c0_i32, %c0_i32_0 : i32, i32
  }
  func.func @transform_5(%arg0: i32) -> (i32, i32, i32) {
    %c0_i32 = arith.constant 0 : i32
    %c0_i32_0 = arith.constant 0 : i32
    %c0_i32_1 = arith.constant 0 : i32
    return %arg0, %c0_i32, %c0_i32_0 : i32, i32, i32
  }
}

</mosaic_0001>

<bundles_post_ra>
// kernel: tpu_custom_call.1
= control target key start
LH: loop header
LB: loop body
LE: loop exit
PB: predicated region body
PF: predicated region fallthrough
CT: control target
= control target key end

     0   :  { %10 = vsyncpa [#allocation3], 0  ;;  %s1300_s0 = inlined_call_operand.hbm [shape: f32[2,32,256], index: 0, kind: input, shape index: {}]   ;;  %s1301_s1 = inlined_call_operand.vmem [shape: f32[32,64], index: 1, kind: input, shape index: {}]   ;;  %s1302_s2 = inlined_call_operand.vmem [shape: f32[32,1], index: 2, kind: input, shape index: {}]   ;;  %s1303_s3 = inlined_call_operand.vmem [shape: f32[32,32], index: 3, kind: input, shape index: {}]   ;;  %s1304_s4 = inlined_call_operand.vmem [shape: f32[32,1], index: 4, kind: input, shape index: {}]   ;;  %s1305_s5 = inlined_call_operand.hbm [shape: f32[2,32,256], index: 5, kind: output, shape index: {}]  }
   0x1   :  { %12 = vsyncpa [#allocation3 + $0x1], 0 }
   0x2   :  { %13 = vsyncpa [#allocation4], 0 }
   0x3   :  { %15 = vsyncpa [#allocation4 + $0x1], 0  ;;  %s982_s18 = smov 0   ;;  %s984_s19 = smov 0  }
   0x4   :  { %s986_s20 = smov 0   ;;  %s988_s21 = smov 0  }
   0x5 LB: > { %s1003_s22 = sadd.s32 4294967295, %s943_s21   ;;  %s670_s23 = sadd.s32 4294967294, %s943_s21   ;;  %s943_s21 = sphi %s988_s21, %s1318_s21   ;;  %s939_s20 = sphi %s986_s20, %s1317_s20   ;;  %s935_s19 = sphi %s984_s19, %s1316_s19   ;;  %s931_s18 = sphi %s982_s18, %s1315_s18  }
   0x6   : > { %s1007_s24 = sadd.s32 1, %s943_s21   ;;  %s28_s25 = sadd.s32 1, %s939_s20 }
   0x7   : > { %s25_s26 = ssub.s32 %s943_s21, %s1007_s24  ;;  %p35_p0 = scmp.ne.s32.totalorder %s939_s20, %s935_s19 }
   0x8   : > { %p26_p1 = scmp.eq.s32.totalorder %s25_s26, 0  ;;  %p36_p2 = scmp.eq.s32.totalorder %s943_s21, 0 }
   0x9   : > { %p41_p3 = scmp.ne.s32.totalorder %s935_s19, %s931_s18  ;;  %p42_p4 = scmp.eq.s32.totalorder %s1003_s22, 0 }
   0xa   : > { %s1019_s27 = scalar_select %p26_p1, %s939_s20, %s28_s25  }
   0xb   : > { %p1021_p5 = por %p36_p2, %p35_p0  ;;  %p1025_p6 = por %p42_p4, %p41_p3 }
   0xc   : > { %p149_p7 = scmp.eq.s32.totalorder %s1003_s22, 1  ;;  %p155_p8 = scmp.eq.s32.totalorder %s670_s23, 1 }
   0xd   : > { %p790_p10 = scmp.lt.s32.totalorder %s943_s21, 2  ;;  %s187_s7 = sand.u32 1, %s939_s20  }
   0xe   : > { %p1032_p11 = por %p149_p7, %p35_p0  ;;  %p1036_p12 = por %p155_p8, %p41_p3 }
   0xf   : > { %s696_s8 = sshll.u32 %s943_s21, 10  ;;  %s673_s9 = sshll.u32 %s187_s7, 6 }
  0x10   : > { %s1309_s30 = scalar_select %p1032_p11, 1, 0 }
  0x11   : > { %s1310_s6 = scalar_select %p1036_p12, 1, 0 }
  0x12   : > { %s1045_s12 = scalar_lea.hbm %s1300_s0, %s696_s8  ;;  %s191_s13 = scalar_lea.vmem [#allocation2], %s673_s9 }
  0x13   : > { %s198_s14 = sshll.u32 %s191_s13, 4  ;;  %p1049_p13 = pnand %p790_p10, %p1021_p5  ;;  %s1053_s14 = int_to_ptr.vmem [resolvable:$true] %s198_s14 }
  0x14   : > { %s1055_s16 = scalar_lea.sflag [#allocation3], %s187_s7  ;;  %s847_s17 = scalar_lea.hbm %s1045_s12, 1024 }
  0x15   : > { %p848_p0 = scmp.ne.s32.totalorder %s1045_s12, %s847_s17  ;;  %p849_p1 = pneg %p1049_p13 }
  0x16   : > { %s852_s26 = scalar_lea.hbm %s1300_s0, 2048  ;;  %p853_p4 = scmp.lt.u32.totalorder %s1045_s12, %s1300_s0 }
  0x17   : > { %p850_p2 = pnand %p849_p1, %p848_p0  ;;  %p854_p5 = scmp.lt.u32.totalorder %s852_s26, %s847_s17 }
  0x18   : > { %p856_p8 = scmp.lt.u32.totalorder %s847_s17, %s1045_s12 }
  0x19   : > { %p851_p3 = pneg %p850_p2  ;;  %p855_p7 = por %p854_p5, %p853_p4 }
  0x1b   : > { %p857_p10 = por %p856_p8, %p855_p7 }
  0x1d   : > { %p858_p9 = pnand %p857_p10, %p851_p3 }
  0x1f   : > { %861 = shalt.err (!%p858_p9)
}
  0x20   : > { %s862_s7 = scalar_lea.vmem %s1053_s14, 1024  ;;  %s945_s9 = smov [#allocation2]  }
  0x21   : > { %p863_p0 = scmp.ne.s32.totalorder %s1053_s14, %s862_s7  ;;  %s867_s10 = sshll.u32 %s945_s9, 4  ;;  %s868_s10 = int_to_ptr.vmem [resolvable:$false] %s867_s10 }
  0x22   : > { %s869_s11 = scalar_lea.vmem %s868_s10, 2048  ;;  %p870_p11 = scmp.lt.s32.totalorder %s1053_s14, %s868_s10 }
  0x23   : > { %p865_p2 = pnand %p863_p0, %p849_p1  ;;  %p871_p4 = scmp.lt.s32.totalorder %s869_s11, %s862_s7 }
  0x25   : > { %p866_p12 = pneg %p865_p2  ;;  %p872_p5 = por %p871_p4, %p870_p11 }
  0x27   : > { %p873_p7 = pnand %p872_p5, %p866_p12 }
  0x29   : > { %876 = shalt.err (!%p873_p7)
}
  0x2a   : > { %s946_s13 = smov 256   ;;  %s947_s17 = smov 16  }
  0x2b   : > { %785 = dma.hbm_to_vmem [thread:$0]  (!%p1049_p13), %s1045_s12, 1024, %s1053_s14, %s1055_s16, %s946_s13, %s946_s13, %s947_s17  }
  0x2c   : > { %p676_p9 = scmp.ge.s32.totalorder %s943_s21, 1  ;;  %p206_p1 = scmp.lt.s32.totalorder %s943_s21, 3 }
  0x2e   : > { %p207_p3 = pnand %p676_p9, %p206_p1 }
  0x2f   : > { %s1086_s23 = sand.u32 (!%p207_p3), 1, %s935_s19  }
  0x30   : > { %210 = sbr.rel (%p207_p3) target bundleno = 851 (0x353), region = 40  ;;  %s677_s25 = sshll.u32 (!%p207_p3), %s1086_s23, 6 }
  0x31   : > { %s213_s26 = scalar_lea.sflag (!%p207_p3), [#allocation3], %s1086_s23  ;;  %s216_s28 = scalar_lea.vmem (!%p207_p3), [#allocation2], %s677_s25 }
  0x37   : > { %922 = dma.done.wait (%p1025_p6), %s213_s26, 1024  }
  0x38   : > { %924 = vsyncadd (%p1025_p6), %s213_s26, 4294966272  ;;  %v1096_v0 = vld [vmem:[%s216_s28 + $0x20] sm:$0xff]  ;;  %v1098_v1 = vld [vmem:[%s216_s28 + $0x28] sm:$0xff]  ;;  %vm307_vm0 = vcmask 523264   ;;  %vm417_vm1 = vcmask 261120   ;;  %s242_s16 = scalar_lea.vmem [#allocation5], %s677_s25 }
  0x39   : > { %v1100_v2 = vld [vmem:[%s216_s28] sm:$0xff]  ;;  %v255_v3 = vmin.f32 %v1096_v0, 0.0  ;;  %v256_v4 = vmin.f32 %v1098_v1, 0.0  ;;  %v1104_v5 = vld [vmem:[%s216_s28 + $0x8] sm:$0xff]  ;;  %v1107_v7 = vld [vmem:[%s216_s28 + $0x30] sm:$0xff]  ;;  %v263_v28 = vmax.f32 %v1096_v0, 0.0 }
  0x3a   : > { %v251_v6 = vmin.f32 %v1100_v2, 0.0  ;;  %v1109_v8 = vld [vmem:[%s216_s28 + $0x38] sm:$0xff]  ;;  %v252_v9 = vmin.f32 %v1104_v5, 0.0  ;;  %v257_v10 = vmin.f32 %v1107_v7, 0.0  ;;  %v1114_v12 = vld [vmem:[%s216_s28 + $0x10] sm:$0xff]  ;;  %v259_v22 = vmax.f32 %v1100_v2, 0.0 }
  0x3b   : > { %v258_v11 = vmin.f32 %v1109_v8, 0.0  ;;  %v1116_v13 = vld [vmem:[%s216_s28 + $0x18] sm:$0xff]  ;;  %v273_v14 = vadd.f32 %v256_v4, %v255_v3  ;;  %v253_v15 = vmin.f32 %v1114_v12, 0.0  ;;  %v261_v19 = vmax.f32 %v1114_v12, 0.0  ;;  %v299_v32 = vld [vmem:[%s1301_s1] sm:$0xff]  ;;  %v300_v53 = vld [vmem:[%s1301_s1 + $0x8] sm:$0xff] }
  0x3c   : > { %v254_v16 = vmin.f32 %v1116_v13, 0.0  ;;  %v267_v17 = vadd.f32 %v252_v9, %v251_v6  ;;  %v262_v20 = vmax.f32 %v1116_v13, 0.0  ;;  %v260_v23 = vmax.f32 %v1104_v5, 0.0  ;;  %734 = vmatprep.mubr.msk.f32.mxu0 %vm307_vm0, %v299_v32  ;;  %v301_v54 = vld [vmem:[%s1301_s1 + $0x10] sm:$0xff]  ;;  %v302_v55 = vld [vmem:[%s1301_s1 + $0x18] sm:$0xff]  ;;  %v409_v56 = vld [vmem:[%s1303_s3] sm:$0xff] }
  0x3d   : > { %274 = vadd.xlane.f32.xlu1 %v273_v14  ;;  %v276_v18 = vadd.f32 %v258_v11, %v257_v10  ;;  %v265_v25 = vmax.f32 %v1107_v7, 0.0  ;;  %v266_v26 = vmax.f32 %v1109_v8, 0.0  ;;  %v264_v29 = vmax.f32 %v1098_v1, 0.0  ;;  %748 = vmatprep.mubr.msk.f32.mxu1 %vm417_vm1, %v409_v56  ;;  %v304_v57 = vld [vmem:[%s1302_s2 + $0x8] sm:$0xff]  ;;  %v303_v58 = vld [vmem:[%s1302_s2] sm:$0xff]  ;;  %v306_v63 = vld [vmem:[%s1302_s2 + $0x18] sm:$0xff] }
  0x3e   : > { %268 = vadd.xlane.f32.xlu0 %v267_v17  ;;  %v270_v21 = vadd.f32 %v254_v16, %v253_v15  ;;  %v286_v24 = vadd.f32 %v262_v20, %v261_v19  ;;  %v283_v27 = vadd.f32 %v260_v23, %v259_v22  ;;  %v305_v17 = vld [vmem:[%s1302_s2 + $0x10] sm:$0xff]  ;;  %s697_s8 = sshll.u32 %s1003_s22, 10  ;;  %s597_s25 = sshll.u32 %s242_s16, 4  ;;  %s1252_s25 = int_to_ptr.vmem [resolvable:$true] %s597_s25 }
  0x3f   : > { %v292_v30 = vadd.f32 %v266_v26, %v265_v25  ;;  %v289_v31 = vadd.f32 %v264_v29, %v263_v28  ;;  %s1250_s10 = scalar_lea.hbm %s1305_s5, %s697_s8  ;;  %s584_s22 = scalar_lea.sflag [#allocation4], %s1086_s23 }
  0x40   : > { %s877_s11 = scalar_lea.vmem %s1252_s25, 1024  ;;  %p1312_p11 = scmp.ne.s32.totalorder %s1309_s30, 0 }
  0x41   : > { %277 = vadd.xlane.f32.xlu1 %v276_v18  ;;  %p878_p6 = scmp.ne.s32.totalorder %s1252_s25, %s877_s11  ;;  %s949_s13 = smov [#allocation5]  }
  0x42   : > { %271 = vadd.xlane.f32.xlu0 %v270_v21  ;;  %s881_s17 = sshll.u32 %s949_s13, 4  ;;  %s882_s17 = int_to_ptr.vmem [resolvable:$false] %s881_s17 }
  0x43   : > { %p879_p12 = pnand %p878_p6, %p1312_p11  ;;  %s883_s26 = scalar_lea.vmem %s882_s17, 2048 }
  0x44   : > { %p884_p8 = scmp.lt.s32.totalorder %s1252_s25, %s882_s17  ;;  %p885_p10 = scmp.lt.s32.totalorder %s883_s26, %s877_s11 }
  0x45   : > { %287 = vadd.xlane.f32.xlu1 %v286_v24  ;;  %p880_p13 = pneg %p879_p12 }
  0x46   : > { %284 = vadd.xlane.f32.xlu0 %v283_v27  ;;  %p886_p0 = por %p885_p10, %p884_p8 }
  0x48   : > { %p887_p2 = pnand %p886_p0, %p880_p13 }
  0x49   : > { %293 = vadd.xlane.f32.xlu1 %v292_v30 }
  0x4a   : > { %290 = vadd.xlane.f32.xlu0 %v289_v31 }
  0xca   : > { %v275_v33 = vpop.xlane.xlu1 %274 }
  0xcb   : > { %v269_v34 = vpop.xlane.xlu0 %268  ;;  %v281_v37 = vmul.f32 0.00390625, %v275_v33 }
  0xcc   : > { %v279_v38 = vmul.f32 0.00390625, %v269_v34 }
  0xce   : > { %v278_v35 = vpop.xlane.xlu1 %277 }
  0xcf   : > { %v272_v36 = vpop.xlane.xlu0 %271  ;;  %v282_v39 = vmul.f32 0.00390625, %v278_v35  ;;  %v410_v35 = vld [vmem:[%s1303_s3 + $0x8] sm:$0xff] }
  0xd0   : > { %v280_v40 = vmul.f32 0.00390625, %v272_v36  ;;  %v411_v36 = vld [vmem:[%s1303_s3 + $0x10] sm:$0xff] }
  0xd1   : > { %v758_v45 = vpack.c.bf16 %v282_v39, %v281_v37  ;;  %v412_v37 = vld [vmem:[%s1303_s3 + $0x18] sm:$0xff]  ;;  %v414_v39 = vld [vmem:[%s1304_s4 + $0x8] sm:$0xff] }
  0xd2   : > { %v754_v41 = vpack.c.bf16 %v280_v40, %v279_v38  ;;  %v288_v42 = vpop.xlane.xlu1 %287  ;;  %v948_v38 = vmov 0   ;;  %v413_v40 = vld [vmem:[%s1304_s4] sm:$0xff] }
  0xd3   : > { %v296_v43 = vmul.f32 0.00390625, %v288_v42  ;;  %v285_v44 = vpop.xlane.xlu0 %284  ;;  %830 = vset.pattern.permute.xlu1 %v948_v38  ;;  %829 = vset.pattern.permute.xlu0 %v948_v38 }
  0xd4   : > { %755 = vmatprep.subr.bf16.mxu0 %v754_v41  ;;  %v295_v46 = vmul.f32 0.00390625, %v285_v44 }
  0xd5   : > { %757 = vmatpush3.bf16.msra.mxu0 %v754_v41 }
  0xd6   : > { %759 = vmatprep.subr.bf16.mxu0 %v758_v45  ;;  %v762_v47 = vpack.c.bf16 %v296_v43, %v295_v46  ;;  %v294_v48 = vpop.xlane.xlu1 %293 }
  0xd7   : > { %v298_v49 = vmul.f32 0.00390625, %v294_v48  ;;  %v291_v50 = vpop.xlane.xlu0 %290 }
  0xd8   : > { %v297_v51 = vmul.f32 0.00390625, %v291_v50 }
  0xd9   : > { %761 = vmatpush3.bf16.msra.mxu0 %v758_v45  ;;  %v416_v45 = vld [vmem:[%s1304_s4 + $0x18] sm:$0xff] }
  0xda   : > { %v766_v52 = vpack.c.bf16 %v298_v49, %v297_v51  ;;  %763 = vmatprep.subr.bf16.mxu0 %v762_v47 }
  0xdd   : > { %765 = vmatpush3.bf16.msra.mxu0 %v762_v47  ;;  %v415_v47 = vld [vmem:[%s1304_s4 + $0x10] sm:$0xff] }
  0xde   : > { %767 = vmatprep.subr.bf16.mxu0 %v766_v52 }
  0xe1   : > { %769 = vmatpush3.bf16.msra.mxu0 %v766_v52 }
  0xe4   : > { %735 = vmatmul.mubr.msk.f32.vlgmr.msra.gmra.mrb[0].mxu0 %vm307_vm0, %v300_v53 }
  0xe5   : > { %737 = vmatprep.mubr.msk.f32.mxu0 %vm307_vm0, %v301_v54 }
  0xe8   : > { %738 = vmatmul.mubr.msk.f32.gmra.mrb[2].mxu0 %vm307_vm0, %v302_v55 }
 0x1b7   : > { %v736_v59 = vpop.f32.mrb[0].mxu0 }
 0x1b8   : > { %v392_v60 = vadd.f32 %v736_v59, %v304_v57  ;;  %v386_v61 = vpop.f32.mrb[1].mxu0 }
 0x1b9   : > { %v387_v62 = vadd.f32 %v386_v61, %v303_v58 }
 0x1ba   : > { %v406_v14 = vmax.f32 %v392_v60, 0.0 }
 0x1bb   : > { %v405_v18 = vmax.f32 %v387_v62, 0.0  ;;  %v739_v21 = vpop.f32.mrb[2].mxu0 }
 0x1bc   : > { %v402_v24 = vadd.f32 %v739_v21, %v306_v63  ;;  %v396_v27 = vpop.f32.mrb[3].mxu0 }
 0x1bd   : > { %v397_v30 = vadd.f32 %v396_v27, %v305_v17  ;;  %v770_v31 = vpack.c.bf16 %v406_v14, %v405_v18 }
 0x1be   : > { %v408_v32 = vmax.f32 %v402_v24, 0.0 }
 0x1bf   : > { %v407_v33 = vmax.f32 %v397_v30, 0.0  ;;  %771 = vmatprep.subr.bf16.mxu1 %v770_v31 }
 0x1c0   : > { %773 = vmatpush3.bf16.msra.mxu1 %v770_v31 }
 0x1c1   : > { %v774_v34 = vpack.c.bf16 %v408_v32, %v407_v33 }
 0x1c3   : > { %775 = vmatprep.subr.bf16.mxu1 %v774_v34 }
 0x1c4   : > { %777 = vmatpush3.bf16.msra.mxu1 %v774_v34 }
 0x1c7   : > { %749 = vmatmul.mubr.msk.f32.vlgmr.msra.gmra.mrb[0].mxu1 %vm417_vm1, %v410_v35 }
 0x1c8   : > { %751 = vmatprep.mubr.msk.f32.mxu1 %vm417_vm1, %v411_v36 }
 0x1cb   : > { %752 = vmatmul.mubr.msk.f32.gmra.mrb[2].mxu1 %vm417_vm1, %v412_v37 }
 0x29a   : > { %v750_v41 = vpop.f32.mrb[0].mxu1 }
 0x29b   : > { %v502_v42 = vadd.f32 %v750_v41, %v414_v39  ;;  %v496_v43 = vpop.f32.mrb[1].mxu1 }
 0x29c   : > { %v497_v44 = vadd.f32 %v496_v43, %v413_v40 }
 0x29d   : > { %v688_v46 = vmul.f32 -1.442695, %v502_v42 }
 0x29e   : > { %v687_v48 = vmul.f32 -1.442695, %v497_v44  ;;  %v753_v49 = vpop.f32.mrb[2].mxu1 }
 0x29f   : > { %831 = vpow2.f32 %v688_v46  ;;  %v512_v50 = vadd.f32 %v753_v49, %v416_v45  ;;  %v506_v51 = vpop.f32.mrb[3].mxu1 }
 0x2a0   : > { %833 = vpow2.f32 %v687_v48  ;;  %v507_v52 = vadd.f32 %v506_v51, %v415_v47 }
 0x2a1   : > { %v690_v53 = vmul.f32 -1.442695, %v512_v50 }
 0x2a2   : > { %v689_v54 = vmul.f32 -1.442695, %v507_v52 }
 0x2a3   : > { %835 = vpow2.f32 %v690_v53 }
 0x2a4   : > { %837 = vpow2.f32 %v689_v54 }
 0x2a9   : > { %v832_v55 = vpop.eup %831 }
 0x2aa   : > { %v834_v56 = vpop.eup %833  ;;  %v528_v57 = vadd.f32 1.0, %v832_v55 }
 0x2ab   : > { %v527_v58 = vadd.f32 1.0, %v834_v56 }
 0x2ac   : > { %839 = vrcp.f32 %v528_v57 }
 0x2ad   : > { %v836_v59 = vpop.eup %835  ;;  %841 = vrcp.f32 %v527_v58 }
 0x2ae   : > { %v838_v60 = vpop.eup %837  ;;  %v530_v62 = vadd.f32 1.0, %v836_v59 }
 0x2af   : > { %v529_v61 = vadd.f32 1.0, %v838_v60 }
 0x2b1   : > { %843 = vrcp.f32 %v529_v61 }
 0x2b2   : > { %845 = vrcp.f32 %v530_v62 }
 0x2b6   : > { %v840_v63 = vpop.eup %839 }
 0x2b7   : > { %v842_v14 = vpop.eup %841  ;;  %546 = vperm.xlu1 %830, %v840_v63  }
 0x2b8   : > { %541 = vperm.xlu0 %829, %v842_v14  }
 0x2bb   : > { %v844_v17 = vpop.eup %843 }
 0x2bc   : > { %551 = vperm.xlu1 %830, %v844_v17   ;;  %v846_v18 = vpop.eup %845 }
 0x2c0   : > { %556 = vperm.xlu1 %830, %v846_v18  }
 0x336   : > { %v547_v21 = vpop.permute.xlu1 %546 }
 0x337   : > { %v561_v24 = vmul.f32 %v547_v21, %v253_v15  ;;  %v562_v27 = vmul.f32 %v547_v21, %v254_v16  ;;  %v542_v30 = vpop.permute.xlu0 %541 }
 0x338   : > { %v559_v31 = vmul.f32 %v542_v30, %v251_v6  ;;  %v560_v32 = vmul.f32 %v542_v30, %v252_v9 }
 0x339   : > { %v569_v33 = vadd.f32 %v561_v24, %v261_v19  ;;  %v570_v34 = vadd.f32 %v562_v27, %v262_v20 }
 0x33a   : > { %v567_v15 = vadd.f32 %v559_v31, %v259_v22  ;;  %v568_v16 = vadd.f32 %v560_v32, %v260_v23 }
 0x33b   : > { %577 = vst [vmem:[%s242_s16 + $0x10] sm:$0xff] %v569_v33  ;;  %578 = vst [vmem:[%s242_s16 + $0x18] sm:$0xff] %v570_v34  ;;  %v552_v6 = vpop.permute.xlu1 %551 }
 0x33c   : > { %575 = vst [vmem:[%s242_s16] sm:$0xff] %v567_v15  ;;  %576 = vst [vmem:[%s242_s16 + $0x8] sm:$0xff] %v568_v16  ;;  %v563_v9 = vmul.f32 %v552_v6, %v255_v3  ;;  %v564_v12 = vmul.f32 %v552_v6, %v256_v4 }
 0x33e   : > { %v571_v2 = vadd.f32 %v563_v9, %v263_v28  ;;  %v572_v5 = vadd.f32 %v564_v12, %v264_v29 }
 0x33f   : > { %v557_v13 = vpop.permute.xlu1 %556 }
 0x340   : > { %579 = vst [vmem:[%s242_s16 + $0x20] sm:$0xff] %v571_v2  ;;  %580 = vst [vmem:[%s242_s16 + $0x28] sm:$0xff] %v572_v5  ;;  %v565_v19 = vmul.f32 %v557_v13, %v257_v10  ;;  %v566_v3 = vmul.f32 %v557_v13, %v258_v11 }
 0x342   : > { %v573_v0 = vadd.f32 %v565_v19, %v265_v25  ;;  %v574_v1 = vadd.f32 %v566_v3, %v266_v26 }
 0x344   : > { %581 = vst [vmem:[%s242_s16 + $0x30] sm:$0xff] %v573_v0  ;;  %582 = vst [vmem:[%s242_s16 + $0x38] sm:$0xff] %v574_v1 }
 0x345   : > { %890 = shalt.err (!%p887_p2)
}
 0x346   : > { %s891_s28 = scalar_lea.hbm %s1250_s10, 1024  ;;  %s895_s14 = scalar_lea.hbm %s1305_s5, 2048 }
 0x347   : > { %p892_p4 = scmp.ne.s32.totalorder %s1250_s10, %s891_s28  ;;  %p896_p9 = scmp.lt.u32.totalorder %s1250_s10, %s1305_s5 }
 0x348   : > { %p897_p1 = scmp.lt.u32.totalorder %s895_s14, %s891_s28  ;;  %p899_p6 = scmp.lt.u32.totalorder %s891_s28, %s1250_s10 }
 0x349   : > { %p893_p5 = pnand %p892_p4, %p1312_p11 }
 0x34a   : > { %p898_p3 = por %p897_p1, %p896_p9 }
 0x34b   : > { %p894_p7 = pneg %p893_p5 }
 0x34c   : > { %p900_p12 = por %p899_p6, %p898_p3 }
 0x34e   : > { %p901_p13 = pnand %p900_p12, %p894_p7 }
 0x350   : > { %904 = shalt.err (!%p901_p13)
}
 0x351   : > { %s950_s8 = smov 256   ;;  %s951_s7 = smov 16  }
 0x352   : > { %780 = dma.vmem_to_hbm [thread:$0]  (%p1312_p11), %s1252_s25, 1024, %s1250_s10, %s584_s22, %s950_s8, %s950_s8, %s951_s7  }
 0x353 PF: > { %s612_s9 = sand.u32 1, %s931_s18   ;;  %p1313_p8 = scmp.ne.s32.totalorder %s1310_s6, 0 }
 0x354   : > { %p1314_p10 = scmp.ge.s32.totalorder %s943_s21, 2  ;;  %s613_s11 = scalar_lea.sflag [#allocation4], %s612_s9 }
 0x356   : > { %p787_p0 = pnand %p1314_p10, %p1313_p8 }
 0x358   : > { %926 = dma.done.wait (!%p787_p0), %s613_s11, 1024  }
 0x359   : > { %928 = vsyncadd (!%p787_p0), %s613_s11, 4294966272  ;;  %p18_p2 = scmp.ge.s32.totalorder %s1007_s24, 4   ;;  %s1315_s18 = smov %s935_s19 }
 0x35a   : > { %s1316_s19 = smov %s939_s20  ;;  %s1317_s20 = smov %s1019_s27 }
 0x35b   : > { %s1318_s21 = smov %s1007_s24  ;;  %20 = sbr.rel (!%p18_p2) target bundleno = 5 (0x5), region = 85 }
 0x362   :  { %618 = vsyncpa [#allocation3], 1 }
 0x363   :  { %620 = vsyncpa [#allocation3 + $0x1], 1 }
 0x364   :  { %621 = vsyncpa [#allocation4], 1 }
 0x365   :  { %623 = vsyncpa [#allocation4 + $0x1], 1 }

</bundles_post_ra>
